<compile_context>
chip_gen: v7x
topology: tpu7x:2x2x1
jax: 0.10.0
libtpu: 0.0.40
codegen_flags: <defaults>
</compile_context>

<pallas_src>
import math
import functools

import jax
import jax.numpy as jnp
from jax import lax
from jax.experimental import pallas as pl
from jax.experimental.pallas import tpu as pltpu

_C_PAD = 128  # lane-dense MXU output width (W.T zero-padded to 128 columns)


def _arcsoftmax_kernel(x_ref, w_ref, labels_ref, o_ref, *,
                       cos_m, sin_m, th, mm, s, easy_margin, eps, n_cls):
    x = x_ref[...].astype(jnp.float32)           # (TILE_N, D)
    w = w_ref[...]                               # (D, 128) f32, zero-padded W.T
    labels = labels_ref[...]                     # (TILE_N, 1) int32

    # raw = x @ W.T on the MXU, rows normalized after the matmul.
    raw = jnp.dot(x, w, preferred_element_type=jnp.float32)    # (TILE_N, 128)
    sumsq = jnp.sum(x * x, axis=-1, keepdims=True)             # (TILE_N, 1)
    inv_norm = lax.rsqrt(jnp.maximum(sumsq, 1e-24))            # EUP slot
    cosine = raw * inv_norm

    # sine = sqrt(clamp(1 - cosine^2, eps, 1)); padded lanes give cosine==0,
    # sine==1, all finite (and are sliced away at the store).
    sine = jnp.sqrt(jnp.clip(1.0 - cosine * cosine, eps, 1.0))
    phi = cosine * cos_m - sine * sin_m
    if easy_margin:
        phi = jnp.where(cosine > 0.0, phi, cosine)
    else:
        phi = jnp.where(cosine > th, phi, cosine - mm)

    # Select phi on the label column, cosine elsewhere (no float one-hot).
    col = lax.broadcasted_iota(jnp.int32, cosine.shape, 1)     # (TILE_N, 128)
    out = jnp.where(col == labels, phi, cosine) * s

    # Narrow store: only the n_cls useful columns go back to HBM.
    o_ref[...] = out[:, :n_cls].astype(o_ref.dtype)


def arc_softmax(x, w, labels, cls_num=None, *, m, s, easy_margin=False,
                eps=1e-07, tile_n=None):
    """x: (N, in_features) f32; w: (out_features, in_features) f32 (PyTorch
    layout); labels: (N,) int.  Returns (N, out_features) f32."""
    del cls_num  # unused in the reference forward
    N, D = x.shape
    C, D2 = w.shape
    assert D == D2
    assert C == 5, "reference hard-codes one_hot width 5"

    # Lane-dense weight for the MXU: W.T zero-padded to 128 output lanes.
    # (For static weights, hoist this outside the per-call path / under jit.)
    w_t = jnp.zeros((D, _C_PAD), dtype=jnp.float32).at[:, :C].set(
        jnp.transpose(w).astype(jnp.float32))
    labels2d = labels.astype(jnp.int32).reshape(N, 1)

    # ---- D-aware row tiling + exact VMEM accounting -------------------------
    d_lane = ((D + 127) // 128) * 128                    # x-block lane padding
    # Double-buffered streamed bytes per row: x + out(5->128 lanes) + labels.
    stream_row_bytes = 2 * (4 * d_lane + 2 * 128 * 4)
    w_bytes = 2 * (((D + 7) // 8) * 8) * _C_PAD * 4      # resident W (2 bufs)

    if tile_n is None:
        t = min((40 << 20) // stream_row_bytes,          # streamed total <=~40 MiB
                (8 << 20) // (4 * d_lane))               # ~8 MiB x tile amortizes
                                                         # the ~0.35 us/step cost
        t = min(t, max(pl.cdiv(N, 2), 8))                # >=2 steps when N allows
                                                         # (v7x 2 TCs + pipelining)
        t = max(8, (t // 8) * 8)                         # (8,128) sublane rule
        tile_n = min(t, N)
    grid = (pl.cdiv(N, tile_n),)

    need = tile_n * stream_row_bytes + w_bytes
    vmem_limit = int(min(max(need + (6 << 20), 16 << 20), 48 << 20))

    kernel = functools.partial(
        _arcsoftmax_kernel,
        cos_m=math.cos(m), sin_m=math.sin(m),
        th=math.cos(math.pi - m), mm=math.sin(math.pi - m) * m,
        s=float(s), easy_margin=bool(easy_margin), eps=float(eps), n_cls=C,
    )

    cost = pl.CostEstimate(
        flops=2 * N * D * _C_PAD + 12 * N * _C_PAD,
        transcendentals=2 * N * _C_PAD,
        bytes_accessed=N * D * 4 + D * _C_PAD * 4 + N * 4 + N * C * 4,
    )

    out = pl.pallas_call(
        kernel,
        out_shape=jax.ShapeDtypeStruct((N, C), jnp.float32),
        grid_spec=pltpu.PrefetchScalarGridSpec(
            num_scalar_prefetch=0,
            grid=grid,
            in_specs=[
                pl.BlockSpec((tile_n, D), lambda i: (i, 0)),        # x: streamed
                pl.BlockSpec((D, _C_PAD), lambda i: (0, 0)),        # W: resident
                pl.BlockSpec((tile_n, 1), lambda i: (i, 0)),        # labels
            ],
            out_specs=pl.BlockSpec((tile_n, C), lambda i: (i, 0)),  # narrow out
        ),
        compiler_params=pltpu.CompilerParams(
            dimension_semantics=("parallel",),   # row tiles independent
            vmem_limit_bytes=vmem_limit,
        ),
        cost_estimate=cost,
    )(x, w_t, labels2d)

    return out


def _reference_jax(x, w, labels, *, m, s, easy_margin=False, eps=1e-07):
    cos_m, sin_m = math.cos(m), math.sin(m)
    th, mm = math.cos(math.pi - m), math.sin(math.pi - m) * m
    x_n = x / jnp.maximum(jnp.linalg.norm(x, axis=-1, keepdims=True), 1e-12)
    cosine = x_n @ w.T
    sine = jnp.sqrt(jnp.clip(1.0 - cosine ** 2, eps, 1.0))
    phi = cosine * cos_m - sine * sin_m
    if easy_margin:
        phi = jnp.where(cosine > 0, phi, cosine)
    else:
        phi = jnp.where(cosine > th, phi, cosine - mm)
    one_hot = jax.nn.one_hot(labels, 5, dtype=jnp.float32)
    return (one_hot * phi + (1.0 - one_hot) * cosine) * s


if __name__ == "__main__":
    # Small shapes consistent with the module: x (N, in_features), labels (N,)
    N, IN_FEATURES, OUT_FEATURES = 8, 32, 5
    M, S = 0.5, 30.0

    key = jax.random.PRNGKey(0)
    kx, kw, kl = jax.random.split(key, 3)

    x = jax.random.normal(kx, (N, IN_FEATURES), dtype=jnp.float32)
    # nn.Linear default init: U(-1/sqrt(in), 1/sqrt(in)), shape (out, in)
    bound = 1.0 / math.sqrt(IN_FEATURES)
    w = jax.random.uniform(kw, (OUT_FEATURES, IN_FEATURES),
                           minval=-bound, maxval=bound, dtype=jnp.float32)
    labels = jax.random.randint(kl, (N,), 0, OUT_FEATURES, dtype=jnp.int32)

    out = arc_softmax(x, w, labels, cls_num=OUT_FEATURES, m=M, s=S)
    out = jax.block_until_ready(out)

    ref = _reference_jax(x, w, labels, m=M, s=S)
    assert out.shape == (N, OUT_FEATURES)
    assert jnp.allclose(out, ref, atol=1e-5, rtol=1e-5)

    print("KERNEL_OK")
</pallas_src>

<mosaic_0001>
module attributes {stable_mosaic.version = 11 : i64} {
  func.func @_arcsoftmax_kernel(%arg0: i32, %arg1: memref<8x32xf32, #tpu.memory_space<vmem>>, %arg2: memref<32x128xf32, #tpu.memory_space<vmem>>, %arg3: memref<8x1xi32, #tpu.memory_space<vmem>>, %arg4: memref<8x5xf32, #tpu.memory_space<vmem>>) attributes {dimension_semantics = [#tpu.dimension_semantics<parallel>], iteration_bounds = array<i64: 1>, scalar_prefetch = 0 : i64, scratch_operands = 0 : i64, tpu.core_type = #tpu.core_type<tc>, window_params = [{transform_indices = @transform_0, window_bounds = array<i64: 8, 32>}, {pipeline_mode = #tpu.pipeline_mode<synchronous>, transform_indices = @transform_1, window_bounds = array<i64: 32, 128>}, {transform_indices = @transform_2, window_bounds = array<i64: 8, 1>}, {transform_indices = @transform_3, window_bounds = array<i64: 8, 5>}]} {
    %c0 = arith.constant 0 : index
    %c0_0 = arith.constant 0 : index
    %0 = vector.load %arg1[%c0, %c0_0] : memref<8x32xf32, #tpu.memory_space<vmem>>, vector<8x32xf32>
    %c0_1 = arith.constant 0 : index
    %c0_2 = arith.constant 0 : index
    %1 = vector.load %arg2[%c0_1, %c0_2] : memref<32x128xf32, #tpu.memory_space<vmem>>, vector<32x128xf32>
    %c0_3 = arith.constant 0 : index
    %c0_4 = arith.constant 0 : index
    %2 = vector.load %arg3[%c0_3, %c0_4] : memref<8x1xi32, #tpu.memory_space<vmem>>, vector<8x1xi32>
    %cst = arith.constant dense<0.000000e+00> : vector<8x128xf32>
    %3 = tpu.matmul %0, %1, %cst {dimension_numbers = #tpu.dot_dimension_numbers<[1], [0], [0], [1], [0, 0, 1, 1], [], []>} : vector<8x32xf32>, vector<32x128xf32>, vector<8x128xf32> -> vector<8x128xf32>
    %4 = arith.mulf %0, %0 : vector<8x32xf32>
    %cst_5 = arith.constant dense<0.000000e+00> : vector<8xf32>
    %5 = vector.multi_reduction <add>, %4, %cst_5 [1] : vector<8x32xf32> to vector<8xf32>
    %6 = vector.shape_cast %5 : vector<8xf32> to vector<8x1xf32>
    %cst_6 = arith.constant 1.000000e-24 : f32
    %7 = vector.broadcast %cst_6 : f32 to vector<8x1xf32>
    %8 = arith.maximumf %6, %7 : vector<8x1xf32>
    %9 = math.rsqrt %8 : vector<8x1xf32>
    %10 = vector.broadcast %9 : vector<8x1xf32> to vector<8x128xf32>
    %11 = arith.mulf %3, %10 : vector<8x128xf32>
    %12 = arith.mulf %11, %11 : vector<8x128xf32>
    %cst_7 = arith.constant 1.000000e+00 : f32
    %13 = vector.broadcast %cst_7 : f32 to vector<8x128xf32>
    %14 = arith.subf %13, %12 : vector<8x128xf32>
    %cst_8 = arith.constant 1.000000e-07 : f32
    %cst_9 = arith.constant 1.000000e+00 : f32
    %15 = vector.broadcast %cst_8 : f32 to vector<8x128xf32>
    %16 = arith.maximumf %15, %14 : vector<8x128xf32>
    %17 = vector.broadcast %cst_9 : f32 to vector<8x128xf32>
    %18 = arith.minimumf %17, %16 : vector<8x128xf32>
    %19 = math.sqrt %18 : vector<8x128xf32>
    %cst_10 = arith.constant 0.87758255 : f32
    %20 = vector.broadcast %cst_10 : f32 to vector<8x128xf32>
    %21 = arith.mulf %11, %20 : vector<8x128xf32>
    %cst_11 = arith.constant 0.47942555 : f32
    %22 = vector.broadcast %cst_11 : f32 to vector<8x128xf32>
    %23 = arith.mulf %19, %22 : vector<8x128xf32>
    %24 = arith.subf %21, %23 : vector<8x128xf32>
    %cst_12 = arith.constant -0.87758255 : f32
    %25 = vector.broadcast %cst_12 : f32 to vector<8x128xf32>
    %26 = arith.cmpf ogt, %11, %25 : vector<8x128xf32>
    %cst_13 = arith.constant 0.239712775 : f32
    %27 = vector.broadcast %cst_13 : f32 to vector<8x128xf32>
    %28 = arith.subf %11, %27 : vector<8x128xf32>
    %29 = arith.select %26, %24, %28 : vector<8x128xi1>, vector<8x128xf32>
    %30 = tpu.iota {dimensions = array<i32: 1>} : vector<8x128xi32>
    %31 = vector.broadcast %2 : vector<8x1xi32> to vector<8x128xi32>
    %32 = arith.cmpi eq, %30, %31 : vector<8x128xi32>
    %33 = arith.select %32, %29, %11 : vector<8x128xi1>, vector<8x128xf32>
    %cst_14 = arith.constant 3.000000e+01 : f32
    %34 = vector.broadcast %cst_14 : f32 to vector<8x128xf32>
    %35 = arith.mulf %33, %34 : vector<8x128xf32>
    %36 = vector.extract_strided_slice %35 {offsets = [0, 0], sizes = [8, 5], strides = [1, 1]} : vector<8x128xf32> to vector<8x5xf32>
    %c0_15 = arith.constant 0 : index
    %c0_16 = arith.constant 0 : index
    %37 = vector.load %arg4[%c0_15, %c0_16] : memref<8x5xf32, #tpu.memory_space<vmem>>, vector<8x5xf32>
    tpu.vector_store %arg4[%c0_15, %c0_16], %36 {strides = array<i32>} : memref<8x5xf32, #tpu.memory_space<vmem>>, vector<8x5xf32>,
    return
  }
  func.func @transform_0(%arg0: i32) -> (i32, i32) {
    %c0_i32 = arith.constant 0 : i32
    %c0_i32_0 = arith.constant 0 : i32
    return %arg0, %c0_i32 : i32, i32
  }
  func.func @transform_1(%arg0: i32) -> (i32, i32) {
    %c0_i32 = arith.constant 0 : i32
    %c0_i32_0 = arith.constant 0 : i32
    %c0_i32_1 = arith.constant 0 : i32
    return %c0_i32, %c0_i32_0 : i32, i32
  }
  func.func @transform_2(%arg0: i32) -> (i32, i32) {
    %c0_i32 = arith.constant 0 : i32
    %c0_i32_0 = arith.constant 0 : i32
    return %arg0, %c0_i32 : i32, i32
  }
  func.func @transform_3(%arg0: i32) -> (i32, i32) {
    %c0_i32 = arith.constant 0 : i32
    %c0_i32_0 = arith.constant 0 : i32
    return %arg0, %c0_i32 : i32, i32
  }
}

</mosaic_0001>

<bundles_post_ra>
// kernel: tpu_custom_call.1
= control target key start
LH: loop header
LB: loop body
LE: loop exit
PB: predicated region body
PF: predicated region fallthrough
CT: control target
= control target key end

     0   :  { %8 = vsyncpa [#allocation3], 0  ;;  %s301_s0 = inlined_call_operand.vmem [shape: f32[8,32], index: 0, kind: input, shape index: {}]   ;;  %s302_s1 = inlined_call_operand.hbm [shape: f32[32,128], index: 1, kind: input, shape index: {}]   ;;  %s303_s2 = inlined_call_operand.vmem [shape: s32[8,1], index: 2, kind: input, shape index: {}]   ;;  %s304_s3 = inlined_call_operand.hbm [shape: f32[8,5], index: 3, kind: output, shape index: {}]  }
   0x1   :  { %9 = vsyncpa [#allocation4], 0  ;;  %s243_s12 = smov [#allocation2]   ;;  %s195_s16 = scalar_lea.hbm %s302_s1, 512 }
   0x2   :  { %s17_s13 = sshll.u32 %s243_s12, 4  ;;  %p196_p0 = scmp.ne.s32.totalorder %s302_s1, %s195_s16  ;;  %s18_s13 = int_to_ptr.vmem [resolvable:$true] %s17_s13 }
   0x3   :  { %p199_p1 = scmp.lt.u32.totalorder %s195_s16, %s302_s1 }
   0x5   :  { %p201_p2 = pnand %p199_p1, %p196_p0 }
   0x7   :  { %204 = shalt.err (!%p201_p2)
}
   0x8   :  { %s205_s21 = scalar_lea.vmem %s18_s13, 512  ;;  %p210_p4 = scmp.lt.s32.totalorder %s18_s13, %s18_s13 }
   0x9   :  { %p206_p3 = scmp.ne.s32.totalorder %s18_s13, %s205_s21  ;;  %p211_p5 = scmp.lt.s32.totalorder %s205_s21, %s205_s21 }
   0xb   :  { %p212_p6 = por %p211_p5, %p210_p4 }
   0xd   :  { %p213_p7 = pnand %p212_p6, %p206_p3 }
   0xf   :  { %216 = shalt.err (!%p213_p7)
}
  0x10   :  { %s244_s22 = smov 128   ;;  %s245_s23 = smov 8  }
  0x11   :  { %23 = dma.hbm_to_vmem [thread:$0]  %s302_s1, 512, %s18_s13, [#allocation3], %s244_s22, %s244_s22, %s245_s23  }
  0x12   :  { %239 = dma.done.wait [#allocation3], 512  }
  0x13   :  { %240 = vsyncadd [#allocation3], 4294966784  ;;  %v246_v0 = vmov 0.0|0.0   ;;  %vm247_vm0 = vmmov 0   ;;  %v248_v1 = vmov 0.0   ;;  %v249_v2 = vmov 0  }
  0x14   :  { %176 = vmatprep.subr.bf16.mxu0 %v246_v0  ;;  %173 = vmatprep.mubr.msk.f32.mxu0 %vm247_vm0, %v248_v1  ;;  %v30_v3 = vld [vmem:[#allocation2] sm:$0xff]  ;;  %v31_v4 = vld [vmem:[#allocation2 + $0x8] sm:$0xff]  ;;  %v32_v5 = vld [vmem:[#allocation2 + $0x10] sm:$0xff]  ;;  %vm35_vm1 = vcmask 261120   ;;  %v133_v23 = vlaneseq  ;;  %vm141_vm6 = vcmask 39936  }
  0x15   :  { %190 = vset.pattern.permute.xlu0 %v249_v2  ;;  %v177_v6 = vpack.c.bf16 %v31_v4, %v30_v3  ;;  %v33_v7 = vld [vmem:[#allocation2 + $0x18] sm:$0xff]  ;;  %v29_v8 = vld [vmem:[%s301_s0] sm:$0xff]  ;;  %s250_s0 = smov [#allocation5]  }
  0x16   :  { %v109_v9 = vmul.f32 %v29_v8, %v29_v8  ;;  %v180_v10 = vpack.c.bf16 %v33_v7, %v32_v5  ;;  %v34_v12 = vld [vmem:[%s303_s2] sm:$0xff]  ;;  %v134_v27 = vand.u32 127, %v133_v23  ;;  %s149_s2 = sshll.u32 %s250_s0, 4  ;;  %s150_s2 = int_to_ptr.vmem [resolvable:$true] %s149_s2 }
  0x17   :  { %178 = vmatpush3.bf16.msra.mxu0 %v177_v6  ;;  %s217_s29 = scalar_lea.vmem %s150_s2, 128  ;;  %p222_p9 = scmp.lt.s32.totalorder %s150_s2, %s150_s2 }
  0x18   :  { %179 = vmatprep.subr.bf16.mxu0 %v246_v0  ;;  %v110_v11 = vsel %vm35_vm1, %v109_v9, 0.0  ;;  %p218_p8 = scmp.ne.s32.totalorder %s150_s2, %s217_s29  ;;  %p223_p10 = scmp.lt.s32.totalorder %s217_s29, %s217_s29 }
  0x19   :  { %111 = vadd.xlane.f32.xlu0 %v110_v11 }
  0x1a   :  { %p224_p11 = por %p223_p10, %p222_p9 }
  0x1b   :  { %181 = vmatpush3.bf16.msra.mxu0 %v180_v10 }
  0x1c   :  { %p225_p12 = pnand %p224_p11, %p218_p8 }
  0x1e   :  { %174 = vmatmul.mubr.msk.f32.vlgmr.msra.gmra.mrb[0].mxu0 %vm35_vm1, %v29_v8 }
  0x2f   :  { %136 = vperm.xlu0 %190, %v34_v12  }
  0xa6   :  { %v112_v13 = vpop.xlane.xlu0 %111 }
  0xa7   :  { %v113_v14 = vmax.f32 %v112_v13, 1e-24 }
  0xa9   :  { %191 = vrsqrt.f32 %v113_v14 }
  0xae   :  { %v137_v29 = vpop.permute.xlu0 %136 }
  0xaf   :  { %vm138_vm4 = vcmp.eq.s32.totalorder %v134_v27, %v137_v29 }
  0xb3   :  { %v192_v15 = vpop.eup %191 }
  0xf1   :  { %v105_v16 = vpop.f32.mrb[0].mxu0 }
  0xf2   :  { %v115_v17 = vmul.f32 %v192_v15, %v105_v16  ;;  %v175_v18 = vpop.f32.mrb[1].mxu0 }
  0xf4   :  { %v116_v19 = vmul.f32 %v115_v17, %v115_v17  ;;  %v127_v31 = vmul.f32 0.87758255, %v115_v17  ;;  %v159_v34 = vadd.f32 -0.23971277, %v115_v17  ;;  %vm130_vm5 = vcmp.gt.f32.partialorder %v115_v17, -0.87758255 }
  0xf6   :  { %v117_v20 = vsub.f32 1.0, %v116_v19 }
  0xf8   :  { %v118_v21 = vmax.f32 %v117_v20, 1e-07 }
  0xfa   :  { %v119_v22 = vmin.f32 %v118_v21, 1.0 }
  0xfc   :  { %193 = vrsqrt.f32 %v119_v22  ;;  %vm122_vm2 = vcmp.eq.f32.partialorder %v119_v22, inf  ;;  %v125_v26 = vand.u32 2147483648, %v119_v22  ;;  %vm124_vm3 = vcmp.eq.f32.partialorder %v119_v22, 0.0 }
 0x106   :  { %v194_v24 = vpop.eup %193 }
 0x107   :  { %v121_v25 = vmul.f32 %v194_v24, %v119_v22 }
 0x109   :  { %v123_v28 = vsel %vm122_vm2, %v119_v22, %v121_v25 }
 0x10a   :  { %v126_v30 = vsel %vm124_vm3, %v125_v26, %v123_v28 }
 0x10b   :  { %v128_v32 = vmul.f32 0.47942555, %v126_v30 }
 0x10d   :  { %v129_v33 = vsub.f32 %v127_v31, %v128_v32 }
 0x10f   :  { %v132_v35 = vsel %vm130_vm5, %v129_v33, %v159_v34 }
 0x110   :  { %v139_v36 = vsel %vm138_vm4, %v132_v35, %v115_v17 }
 0x111   :  { %v140_v37 = vmul.f32 30.0, %v139_v36 }
 0x113   :  { %142 = vst.msk [vmem:[#allocation5] sm:$0xff] %vm141_vm6, %v140_v37 }
 0x114   :  { %228 = shalt.err (!%p225_p12)
}
 0x115   :  { %s229_s5 = scalar_lea.hbm %s304_s3, 128 }
 0x116   :  { %p230_p13 = scmp.ne.s32.totalorder %s304_s3, %s229_s5  ;;  %p233_p0 = scmp.lt.u32.totalorder %s229_s5, %s304_s3 }
 0x118   :  { %p235_p1 = pnand %p233_p0, %p230_p13 }
 0x11a   :  { %238 = shalt.err (!%p235_p1)
}
 0x11b   :  { %152 = dma.vmem_to_hbm [thread:$0]  %s150_s2, 128, %s304_s3, [#allocation4]  }
 0x11c   :  { %241 = dma.done.wait [#allocation4], 128  }
 0x11d   :  { %242 = vsyncadd [#allocation4], 4294967168 }
 0x11e   :  { %156 = vsyncpa [#allocation3], 1 }
 0x11f   :  { %157 = vsyncpa [#allocation4], 1 }

</bundles_post_ra>
